<compile_context>
chip_gen: v5e
topology: v5e:2x2
jax: 0.10.0
libtpu: 0.0.40
codegen_flags: <defaults>
</compile_context>

<pallas_src>
import functools

import jax
import jax.numpy as jnp
from jax.experimental import pallas as pl
from jax.experimental.pallas import tpu as pltpu


def _ddit_final_kernel(x_ref, w_ref, b_ref, o_ref, xn_ref, *, eps, inv_d):
    j = pl.program_id(1)

    # LayerNorm only when the row tile changes (j == 0); cached in VMEM scratch and
    # reused for every output-column tile of this row tile.
    @pl.when(j == 0)
    def _():
        xf = x_ref[...].astype(jnp.float32)                        # [tm, D]
        s1 = jnp.sum(xf, axis=-1, keepdims=True)                   # one-pass stats
        s2 = jnp.sum(xf * xf, axis=-1, keepdims=True)
        mu = s1 * inv_d
        var = jnp.maximum(s2 * inv_d - mu * mu, 0.0)
        xn = (xf - mu) * jax.lax.rsqrt(var + eps)
        xn_ref[...] = xn.astype(xn_ref.dtype)                      # bf16 by default

    # MXU matmul (bf16 operands by default), f32 accumulation.
    y = jnp.dot(xn_ref[...], w_ref[...], preferred_element_type=jnp.float32)
    y = y + b_ref[...].astype(jnp.float32)                         # [tm, tn]
    o_ref[...] = y.astype(o_ref.dtype)


def _round_up(x, m):
    return ((x + m - 1) // m) * m


def _vmem_capacity_bytes():
    cap = 0
    try:
        cap = int(getattr(pltpu.get_tpu_info(), "vmem_capacity_bytes", 0) or 0)
    except Exception:
        cap = 0
    if cap > 0:
        return cap
    try:
        kind = jax.devices()[0].device_kind.lower()
    except Exception:
        kind = ""
    return (64 << 20) if "v7" in kind else (128 << 20)


def _default_tm_target(vmem_cap):
    try:
        kind = jax.devices()[0].device_kind.lower()
    except Exception:
        kind = ""
    if "v5 lite" in kind or "v5e" in kind or "v5lite" in kind:
        return 512                      # v5e: machine balance ~240 flops/byte
    if vmem_cap <= (64 << 20):
        return 512                      # v7x: only 64 MiB VMEM per TensorCore
    return 1024                         # v6e / other 128 MiB parts


def _choose_tm(R, D, tn, x_bytes, c_bytes, o_bytes, vmem_budget, tm_target):
    """Largest tm (multiple of 16) <= tm_target whose tiles fit the VMEM budget."""
    def need(tm):
        return (2 * tm * D * x_bytes          # x tile, double-buffered
                + tm * D * c_bytes            # cached LayerNorm scratch (single)
                + 2 * D * tn * c_bytes        # weight tile, double-buffered
                + 2 * tm * tn * o_bytes       # output tile, double-buffered
                + 2 * tn * 4                  # bias tile
                + (2 << 20))                  # compiler-internal headroom

    cap = min(tm_target, max(_round_up(R, 16), 16))
    candidates = [cap] + [c for c in (1024, 768, 512, 384, 256, 128, 64, 32, 16)
                          if c < cap]
    tm = candidates[-1]
    for t in candidates:
        if need(t) <= vmem_budget:
            tm = t
            break
    # Keep >= 2 row tiles so both TensorCores get work on dual-TC parts (v7x).
    if R >= 256 and tm >= R:
        tm = max(_round_up((R + 1) // 2, 16), 16)
    return tm


def ddit_final_layer(x, c, params, *, eps=1e-5, matmul_dtype=jnp.bfloat16,
                     out_dtype=None, tm=None, tn=512):
    """x: [B, S, D]; c: conditioning (unused by DDitFinalLayer.forward).

    params: {"gamma": [D], "w": [D, out]  (== torch linear.weight.T), "b": [out]}
    matmul_dtype: MXU operand dtype (bf16 default, f32 accumulation always);
                  pass jnp.float32 for the exact path.
    out_dtype:    output dtype (default x.dtype); pass bf16 to halve output writeback.
    """
    del c  # DDitFinalLayer.forward ignores the conditioning input.
    B, S, D = x.shape
    out_dim = params["w"].shape[1]
    R = B * S
    out_dtype = x.dtype if out_dtype is None else jnp.dtype(out_dtype)
    cdt = jnp.dtype(matmul_dtype)

    # Fold gamma into the weight: (xhat * gamma) @ W == xhat @ (diag(gamma) W).
    w = (params["gamma"].astype(jnp.float32)[:, None]
         * params["w"].astype(jnp.float32)).astype(cdt)            # [D, out]
    b = params["b"].reshape(1, out_dim).astype(jnp.float32)
    x2 = x.reshape(R, D)

    vmem_cap = _vmem_capacity_bytes()
    vmem_budget = vmem_cap * 3 // 4
    tm_target = tm if tm is not None else _default_tm_target(vmem_cap)

    x_bytes = x2.dtype.itemsize
    c_bytes = cdt.itemsize
    o_bytes = out_dtype.itemsize

    # Lane-dense output tiles; never fall back to a full-extent (vocab-wide) block.
    tn = _round_up(min(tn, _round_up(out_dim, 128)), 128)
    tm_ = _choose_tm(R, D, tn, x_bytes, c_bytes, o_bytes, vmem_budget, tm_target)

    # Pad instead of full-extent fallback (safe for odd R and vocab-sized out_dim).
    R_pad = _round_up(R, tm_)
    N_pad = _round_up(out_dim, tn)
    if R_pad != R:
        x2 = jnp.pad(x2, ((0, R_pad - R), (0, 0)))
    if N_pad != out_dim:
        w = jnp.pad(w, ((0, 0), (0, N_pad - out_dim)))
        b = jnp.pad(b, ((0, 0), (0, N_pad - out_dim)))

    grid = (R_pad // tm_, N_pad // tn)

    need = (2 * tm_ * D * x_bytes + tm_ * D * c_bytes + 2 * D * tn * c_bytes
            + 2 * tm_ * tn * o_bytes + 2 * tn * 4)
    vmem_limit = int(min(max(need + (need >> 2), 32 << 20), vmem_cap * 7 // 8))

    flops = 2 * R_pad * D * N_pad + 8 * R_pad * D
    # Weight stream is re-read once per row tile — report the real HBM footprint.
    bytes_accessed = (R_pad * D * x_bytes
                      + (R_pad // tm_) * D * N_pad * c_bytes
                      + R_pad * N_pad * o_bytes + N_pad * 4)

    kernel = functools.partial(_ddit_final_kernel, eps=eps, inv_d=1.0 / D)

    grid_spec = pltpu.PrefetchScalarGridSpec(
        num_scalar_prefetch=0,
        grid=grid,
        in_specs=[
            pl.BlockSpec((tm_, D), lambda i, j: (i, 0)),   # x rows, full hidden dim
            pl.BlockSpec((D, tn), lambda i, j: (0, j)),    # (gamma-folded) weight tile
            pl.BlockSpec((1, tn), lambda i, j: (0, j)),    # bias tile
        ],
        out_specs=pl.BlockSpec((tm_, tn), lambda i, j: (i, j)),
        scratch_shapes=[pltpu.VMEM((tm_, D), cdt)],        # cached LayerNorm result
    )

    y = pl.pallas_call(
        kernel,
        out_shape=jax.ShapeDtypeStruct((R_pad, N_pad), out_dtype),
        grid_spec=grid_spec,
        compiler_params=pltpu.CompilerParams(
            dimension_semantics=("parallel", "arbitrary"),
            vmem_limit_bytes=vmem_limit),
        cost_estimate=pl.CostEstimate(flops=int(flops), transcendentals=int(R_pad),
                                      bytes_accessed=int(bytes_accessed)),
    )(x2, w, b)

    return y[:R, :out_dim].reshape(B, S, out_dim)


def _reference(x, params, eps=1e-5):
    xf = x.astype(jnp.float32)
    mu = jnp.mean(xf, axis=-1, keepdims=True)
    var = jnp.mean((xf - mu) ** 2, axis=-1, keepdims=True)
    xn = (xf - mu) * jax.lax.rsqrt(var + eps) * params["gamma"]
    return xn @ params["w"] + params["b"]


if __name__ == "__main__":
    # Small shapes: batch=2, seq=64, hidden=128, out_channels=256.
    B, S, D, OUT = 2, 64, 128, 256
    key = jax.random.PRNGKey(0)
    kx, kc, kw, kb, kg = jax.random.split(key, 5)

    x = jax.random.normal(kx, (B, S, D), jnp.float32)
    c = jax.random.normal(kc, (B, 4 * D), jnp.float32)    # conditioning, unused by forward

    # The PyTorch module zero-initialises the linear; use random weights here so the
    # numerical check is meaningful (zero-init checked separately below).
    params = {
        "gamma": 1.0 + 0.1 * jax.random.normal(kg, (D,), jnp.float32),
        "w": 0.02 * jax.random.normal(kw, (D, OUT), jnp.float32),   # == torch weight.T
        "b": 0.02 * jax.random.normal(kb, (OUT,), jnp.float32),
    }
    ref = _reference(x, params)

    # Default (bf16 MXU operands, f32 LN + f32 accumulation) — performance path.
    out = jax.block_until_ready(ddit_final_layer(x, c, params))
    assert out.shape == (B, S, OUT)
    assert jnp.all(jnp.isfinite(out))
    assert jnp.allclose(out, ref, atol=5e-2, rtol=5e-2)

    # Exact f32 path (matches the PyTorch forward bit-for-bit up to reassociation).
    out_f32 = jax.block_until_ready(
        ddit_final_layer(x, c, params, matmul_dtype=jnp.float32))
    assert jnp.allclose(out_f32, ref, atol=1e-3, rtol=1e-3)

    # Padded path: non-128-divisible out_dim and non-tile-divisible row count.
    Bp, Sp, OUTp = 2, 25, 200
    xp = jax.random.normal(kx, (Bp, Sp, D), jnp.float32)
    params_p = {
        "gamma": params["gamma"],
        "w": 0.02 * jax.random.normal(kw, (D, OUTp), jnp.float32),
        "b": 0.02 * jax.random.normal(kb, (OUTp,), jnp.float32),
    }
    ref_p = _reference(xp, params_p)
    out_p = jax.block_until_ready(ddit_final_layer(xp, c, params_p))
    assert out_p.shape == (Bp, Sp, OUTp)
    assert jnp.all(jnp.isfinite(out_p))
    assert jnp.allclose(out_p, ref_p, atol=5e-2, rtol=5e-2)

    # Zero-initialised linear (the module's actual init) -> output is exactly zero.
    zero_params = {"gamma": params["gamma"],
                   "w": jnp.zeros((D, OUT), jnp.float32),
                   "b": jnp.zeros((OUT,), jnp.float32)}
    out_zero = jax.block_until_ready(ddit_final_layer(x, c, zero_params))
    assert jnp.allclose(out_zero, 0.0)

    print("KERNEL_OK")
</pallas_src>

<mosaic_0001>
module attributes {stable_mosaic.version = 11 : i64} {
  func.func @_ddit_final_kernel(%arg0: i32, %arg1: i32, %arg2: memref<128x128xf32, #tpu.memory_space<vmem>>, %arg3: memref<128x256xbf16, #tpu.memory_space<vmem>>, %arg4: memref<1x256xf32, #tpu.memory_space<vmem>>, %arg5: memref<128x256xf32, #tpu.memory_space<vmem>>, %arg6: memref<128x128xbf16, #tpu.memory_space<vmem>>) attributes {dimension_semantics = [#tpu.dimension_semantics<parallel>, #tpu.dimension_semantics<arbitrary>], iteration_bounds = array<i64: 1, 1>, scalar_prefetch = 0 : i64, scratch_operands = 1 : i64, tpu.core_type = #tpu.core_type<tc>, window_params = [{transform_indices = @transform_0, window_bounds = array<i64: 128, 128>}, {transform_indices = @transform_1, window_bounds = array<i64: 128, 256>}, {transform_indices = @transform_2, window_bounds = array<i64: 1, 256>}, {transform_indices = @transform_3, window_bounds = array<i64: 128, 256>}]} {
    %c0_i32 = arith.constant 0 : i32
    %0 = arith.cmpi eq, %arg1, %c0_i32 : i32
    %1 = arith.extui %0 : i1 to i32
    %c0_i32_0 = arith.constant 0 : i32
    %2 = arith.cmpi ne, %1, %c0_i32_0 : i32
    scf.if %2 {
      %c0_8 = arith.constant 0 : index
      %c0_9 = arith.constant 0 : index
      %10 = vector.load %arg2[%c0_8, %c0_9] : memref<128x128xf32, #tpu.memory_space<vmem>>, vector<128x128xf32>
      %cst_10 = arith.constant dense<0.000000e+00> : vector<128xf32>
      %11 = vector.multi_reduction <add>, %10, %cst_10 [1] : vector<128x128xf32> to vector<128xf32>
      %12 = vector.shape_cast %11 : vector<128xf32> to vector<128x1xf32>
      %13 = arith.mulf %10, %10 : vector<128x128xf32>
      %cst_11 = arith.constant dense<0.000000e+00> : vector<128xf32>
      %14 = vector.multi_reduction <add>, %13, %cst_11 [1] : vector<128x128xf32> to vector<128xf32>
      %15 = vector.shape_cast %14 : vector<128xf32> to vector<128x1xf32>
      %cst_12 = arith.constant 7.812500e-03 : f32
      %16 = vector.broadcast %cst_12 : f32 to vector<128x1xf32>
      %17 = arith.mulf %12, %16 : vector<128x1xf32>
      %cst_13 = arith.constant 7.812500e-03 : f32
      %18 = vector.broadcast %cst_13 : f32 to vector<128x1xf32>
      %19 = arith.mulf %15, %18 : vector<128x1xf32>
      %20 = arith.mulf %17, %17 : vector<128x1xf32>
      %21 = arith.subf %19, %20 : vector<128x1xf32>
      %cst_14 = arith.constant 0.000000e+00 : f32
      %22 = vector.broadcast %cst_14 : f32 to vector<128x1xf32>
      %23 = arith.maximumf %21, %22 : vector<128x1xf32>
      %24 = vector.broadcast %17 : vector<128x1xf32> to vector<128x128xf32>
      %25 = arith.subf %10, %24 : vector<128x128xf32>
      %cst_15 = arith.constant 9.99999974E-6 : f32
      %26 = vector.broadcast %cst_15 : f32 to vector<128x1xf32>
      %27 = arith.addf %23, %26 : vector<128x1xf32>
      %28 = math.rsqrt %27 : vector<128x1xf32>
      %29 = vector.broadcast %28 : vector<128x1xf32> to vector<128x128xf32>
      %30 = arith.mulf %25, %29 : vector<128x128xf32>
      %31 = arith.truncf %30 : vector<128x128xf32> to vector<128x128xbf16>
      %c0_16 = arith.constant 0 : index
      %c0_17 = arith.constant 0 : index
      %32 = vector.load %arg6[%c0_16, %c0_17] : memref<128x128xbf16, #tpu.memory_space<vmem>>, vector<128x128xbf16>
      tpu.vector_store %arg6[%c0_16, %c0_17], %31 {strides = array<i32>} : memref<128x128xbf16, #tpu.memory_space<vmem>>, vector<128x128xbf16>,
    } else {
    }
    %c0 = arith.constant 0 : index
    %c0_1 = arith.constant 0 : index
    %3 = vector.load %arg6[%c0, %c0_1] : memref<128x128xbf16, #tpu.memory_space<vmem>>, vector<128x128xbf16>
    %c0_2 = arith.constant 0 : index
    %c0_3 = arith.constant 0 : index
    %4 = vector.load %arg3[%c0_2, %c0_3] : memref<128x256xbf16, #tpu.memory_space<vmem>>, vector<128x256xbf16>
    %cst = arith.constant dense<0.000000e+00> : vector<128x256xf32>
    %5 = tpu.matmul %3, %4, %cst {dimension_numbers = #tpu.dot_dimension_numbers<[1], [0], [0], [1], [0, 0, 1, 1], [], []>} : vector<128x128xbf16>, vector<128x256xbf16>, vector<128x256xf32> -> vector<128x256xf32>
    %c0_4 = arith.constant 0 : index
    %c0_5 = arith.constant 0 : index
    %6 = vector.load %arg4[%c0_4, %c0_5] : memref<1x256xf32, #tpu.memory_space<vmem>>, vector<1x256xf32>
    %7 = vector.broadcast %6 : vector<1x256xf32> to vector<128x256xf32>
    %8 = arith.addf %5, %7 : vector<128x256xf32>
    %c0_6 = arith.constant 0 : index
    %c0_7 = arith.constant 0 : index
    %9 = vector.load %arg5[%c0_6, %c0_7] : memref<128x256xf32, #tpu.memory_space<vmem>>, vector<128x256xf32>
    tpu.vector_store %arg5[%c0_6, %c0_7], %8 {strides = array<i32>} : memref<128x256xf32, #tpu.memory_space<vmem>>, vector<128x256xf32>,
    return
  }
  func.func @transform_0(%arg0: i32, %arg1: i32) -> (i32, i32) {
    %c0_i32 = arith.constant 0 : i32
    %c0_i32_0 = arith.constant 0 : i32
    return %arg0, %c0_i32 : i32, i32
  }
  func.func @transform_1(%arg0: i32, %arg1: i32) -> (i32, i32) {
    %c0_i32 = arith.constant 0 : i32
    %c0_i32_0 = arith.constant 0 : i32
    return %c0_i32, %arg1 : i32, i32
  }
  func.func @transform_2(%arg0: i32, %arg1: i32) -> (i32, i32) {
    %c0_i32 = arith.constant 0 : i32
    %c0_i32_0 = arith.constant 0 : i32
    return %c0_i32, %arg1 : i32, i32
  }
  func.func @transform_3(%arg0: i32, %arg1: i32) -> (i32, i32) {
    %c0_i32 = arith.constant 0 : i32
    return %arg0, %arg1 : i32, i32
  }
}

</mosaic_0001>

<bundles_post_ra>
// kernel: tpu_custom_call.1
= control target key start
LH: loop header
LB: loop body
LE: loop exit
PB: predicated region body
PF: predicated region fallthrough
CT: control target
= control target key end

     0   :  { %8 = vsyncpa [#allocation4], 0  ;;  %s1493_s0 = inlined_call_operand.hbm [shape: f32[128,128], index: 0, kind: input, shape index: {}]   ;;  %s1494_s1 = inlined_call_operand.hbm [shape: bf16[128,256], index: 1, kind: input, shape index: {}]   ;;  %s1495_s2 = inlined_call_operand.hbm [shape: f32[1,256], index: 2, kind: input, shape index: {}]   ;;  %s1496_s3 = inlined_call_operand.hbm [shape: f32[128,256], index: 3, kind: output, shape index: {}]  }
   0x1   :  { %9 = vsyncpa [#allocation7], 0 }
   0x2   :  { %10 = vsyncpa [#allocation5], 0  ;;  %s28_s14 = sshll.u32 %s1494_s1, 4  ;;  %s1121_s15 = smov [#allocation6]   ;;  %s29_s14 = int_to_ptr.hbm [resolvable:$true] %s28_s14 }
   0x3   :  { %s30_s16 = sshll.u32 %s1121_s15, 4  ;;  %s15_s19 = sshll.u32 %s1493_s0, 4  ;;  %s31_s16 = int_to_ptr.vmem [resolvable:$true] %s30_s16  ;;  %s16_s19 = int_to_ptr.hbm [resolvable:$true] %s15_s19 }
   0x4   :  { %s1122_s20 = smov 128   ;;  %s1123_s21 = smov 8  }
   0x5   :  { %36 = dma.hbm_to_vmem [thread:$0]  %s29_s14, 2048, %s31_s16, [#allocation7], %s1122_s20, %s1122_s20, %s1123_s21  }
   0x6   :  { %s1124_s22 = smov [#allocation3]   ;;  %s42_s26 = sshll.u32 %s1495_s2, 4  ;;  %s43_s26 = int_to_ptr.hbm [resolvable:$true] %s42_s26 }
   0x7   :  { %s17_s23 = sshll.u32 %s1124_s22, 4  ;;  %s1125_s1 = smov [#allocation8]   ;;  %s18_s23 = int_to_ptr.vmem [resolvable:$true] %s17_s23 }
   0x8   :  { %23 = dma.hbm_to_vmem [thread:$0]  %s16_s19, 2048, %s18_s23, [#allocation4], %s1122_s20, %s1122_s20, %s1123_s21  }
   0x9   :  { %s44_s27 = sshll.u32 %s1125_s1, 4  ;;  %s45_s27 = int_to_ptr.vmem [resolvable:$true] %s44_s27 }
   0xa   :  { %47 = dma.hbm_to_vmem [thread:$0]  %s43_s26, 32, %s45_s27, [#allocation7]  }
   0xb   :  { %1115 = dma.done.wait [#allocation4], 2048  }
   0xc   :  { %1116 = vsyncadd [#allocation4], 4294965248 }
   0xd   :  { %1117 = dma.done.wait [#allocation7], 2080  }
   0xe   :  { %1118 = vsyncadd [#allocation7], 4294965216  ;;  %v1158_v0 = vld [vmem:[#allocation3 + $0x40] sm:$0xff]  ;;  %v1166_v3 = vld [vmem:[#allocation3 + $0x48] sm:$0xff]  ;;  %s1126_s0 = smov [#allocation9]   ;;  %s782_s30 = sshll.u32 %s1496_s3, 4  ;;  %s783_s30 = int_to_ptr.hbm [resolvable:$true] %s782_s30 }
   0xf   :  { %v1160_v1 = vld [vmem:[#allocation3] sm:$0xff]  ;;  %96 = vadd.xlane.f32.xlu0 %v1158_v0  ;;  %v120_v2 = vmul.f32 %v1158_v0, %v1158_v0  ;;  %v1168_v4 = vld [vmem:[#allocation3 + $0x8] sm:$0xff]  ;;  %v121_v5 = vmul.f32 %v1166_v3, %v1166_v3  ;;  %v1176_v7 = vld [vmem:[#allocation3 + $0x50] sm:$0xff]  ;;  %s780_s2 = sshll.u32 %s1126_s0, 4  ;;  %s1127_s4 = smov 256   ;;  %s781_s2 = int_to_ptr.vmem [resolvable:$true] %s780_s2 }
  0x10   :  { %80 = vadd.xlane.f32.xlu2 %v1160_v1  ;;  %v112_v6 = vmul.f32 %v1160_v1, %v1160_v1  ;;  %v113_v8 = vmul.f32 %v1168_v4, %v1168_v4  ;;  %v1181_v9 = vld [vmem:[#allocation3 + $0x58] sm:$0xff]  ;;  %v122_v11 = vmul.f32 %v1176_v7, %v1176_v7  ;;  %v1188_v12 = vld [vmem:[#allocation3 + $0x10] sm:$0xff]  ;;  %v1198_v16 = vld [vmem:[#allocation3 + $0x68] sm:$0xff]  ;;  %s1128_s5 = smov 16  }
  0x11   :  { %144 = vadd.xlane.f32.xlu1 %v120_v2  ;;  %v123_v10 = vmul.f32 %v1181_v9, %v1181_v9  ;;  %v114_v13 = vmul.f32 %v1188_v12, %v1188_v12  ;;  %v1192_v14 = vld [vmem:[#allocation3 + $0x18] sm:$0xff]  ;;  %v1200_v17 = vld [vmem:[#allocation3 + $0x60] sm:$0xff]  ;;  %v125_v20 = vmul.f32 %v1198_v16, %v1198_v16  ;;  %v1211_v21 = vld [vmem:[#allocation3 + $0x28] sm:$0xff] }
  0x12   :  { %v115_v15 = vmul.f32 %v1192_v14, %v1192_v14  ;;  %v124_v18 = vmul.f32 %v1200_v17, %v1200_v17  ;;  %v1206_v19 = vld [vmem:[#allocation3 + $0x20] sm:$0xff]  ;;  %v117_v22 = vmul.f32 %v1211_v21, %v1211_v21  ;;  %v1218_v24 = vld [vmem:[#allocation3 + $0x70] sm:$0xff]  ;;  %v1222_v26 = vld [vmem:[#allocation3 + $0x78] sm:$0xff] }
  0x13   :  { %v116_v23 = vmul.f32 %v1206_v19, %v1206_v19  ;;  %v126_v25 = vmul.f32 %v1218_v24, %v1218_v24  ;;  %v127_v27 = vmul.f32 %v1222_v26, %v1222_v26  ;;  %v1228_v28 = vld [vmem:[#allocation3 + $0x38] sm:$0xff]  ;;  %v1230_v29 = vld [vmem:[#allocation3 + $0x30] sm:$0xff]  ;;  %v878_v38 = vld [vmem:[#allocation6 + $0x60] sm:$0xf] }
  0x14   :  { %v118_v30 = vmul.f32 %v1230_v29, %v1230_v29  ;;  %v119_v31 = vmul.f32 %v1228_v28, %v1228_v28  ;;  %v886_v32 = vld [vmem:[#allocation6 + $0x70] sm:$0xf]  ;;  %v915_v33 = vld [vmem:[#allocation6 + $0x74] sm:$0xf0]  ;;  %v914_v34 = vld [vmem:[#allocation6 + $0x74] sm:$0xf] }
  0x15   :  { %v887_v35 = vor.u32 %v915_v33, %v886_v32  ;;  %v888_v36 = vld [vmem:[#allocation6 + $0x78] sm:$0xf0]  ;;  %v913_v39 = vld [vmem:[#allocation6 + $0x64] sm:$0xf0]  ;;  %v912_v40 = vld [vmem:[#allocation6 + $0x64] sm:$0xf] }
  0x16   :  { %v891_v37 = vor.u32 %v914_v34, %v888_v36  ;;  %v879_v41 = vor.u32 %v913_v39, %v878_v38  ;;  %v880_v42 = vld [vmem:[#allocation6 + $0x68] sm:$0xf0]  ;;  %v870_v44 = vld [vmem:[#allocation6 + $0x50] sm:$0xf]  ;;  %v911_v45 = vld [vmem:[#allocation6 + $0x54] sm:$0xf0] }
  0x17   :  { %98 = vadd.xlane.f32.xlu0 %v1166_v3  ;;  %963 = vmatpush.bf16.msra.mxu2 %v887_v35  ;;  %v883_v43 = vor.u32 %v912_v40, %v880_v42  ;;  %v910_v46 = vld [vmem:[#allocation6 + $0x54] sm:$0xf]  ;;  %v871_v47 = vor.u32 %v911_v45, %v870_v44  ;;  %v872_v48 = vld [vmem:[#allocation6 + $0x58] sm:$0xf0]  ;;  %v862_v50 = vld [vmem:[#allocation6 + $0x40] sm:$0xf] }
  0x18   :  { %82 = vadd.xlane.f32.xlu2 %v1168_v4  ;;  %646 = vmatpush.bf16.msra.mxu0 %v887_v35  ;;  %v875_v49 = vor.u32 %v910_v46, %v872_v48  ;;  %v909_v51 = vld [vmem:[#allocation6 + $0x44] sm:$0xf0]  ;;  %v908_v52 = vld [vmem:[#allocation6 + $0x44] sm:$0xf]  ;;  %v864_v54 = vld [vmem:[#allocation6 + $0x48] sm:$0xf0] }
  0x19   :  { %146 = vadd.xlane.f32.xlu1 %v121_v5  ;;  %971 = vmatpush.bf16.msra.mxu3 %v891_v37  ;;  %v863_v53 = vor.u32 %v909_v51, %v862_v50  ;;  %v867_v57 = vor.u32 %v908_v52, %v864_v54  ;;  %v854_v60 = vld [vmem:[#allocation6 + $0x30] sm:$0xf]  ;;  %v907_v61 = vld [vmem:[#allocation6 + $0x34] sm:$0xf0]  ;;  %v906_v62 = vld [vmem:[#allocation6 + $0x34] sm:$0xf] }
  0x1a   :  { %695 = vmatpush.bf16.msra.mxu1 %v891_v37  ;;  %v856_v5 = vld [vmem:[#allocation6 + $0x38] sm:$0xf0]  ;;  %v838_v34 = vld [vmem:[#allocation6 + $0x10] sm:$0xf]  ;;  %v903_v35 = vld [vmem:[#allocation6 + $0x14] sm:$0xf0] }
  0x1b   :  { %964 = vmatpush.bf16.msra.mxu2 %v879_v41  ;;  %v902_v36 = vld [vmem:[#allocation6 + $0x14] sm:$0xf]  ;;  %v839_v38 = vor.u32 %v903_v35, %v838_v34  ;;  %v840_v39 = vld [vmem:[#allocation6 + $0x18] sm:$0xf0]  ;;  %v830_v44 = vld [vmem:[#allocation6] sm:$0xf] }
  0x1c   :  { %647 = vmatpush.bf16.msra.mxu0 %v879_v41  ;;  %v843_v42 = vor.u32 %v902_v36, %v840_v39  ;;  %v901_v45 = vld [vmem:[#allocation6 + $0x4] sm:$0xf0]  ;;  %v900_v46 = vld [vmem:[#allocation6 + $0x4] sm:$0xf]  ;;  %v832_v51 = vld [vmem:[#allocation6 + $0x8] sm:$0xf0] }
  0x1d   :  { %972 = vmatpush.bf16.msra.mxu3 %v883_v43  ;;  %v831_v50 = vor.u32 %v901_v45, %v830_v44 }
  0x1e   :  { %696 = vmatpush.bf16.msra.mxu1 %v883_v43 }
  0x1f   :  { %128 = vadd.xlane.f32.xlu0 %v112_v6  ;;  %965 = vmatpush.bf16.msra.mxu2 %v871_v47  ;;  %v855_v6 = vor.u32 %v907_v61, %v854_v60 }
  0x20   :  { %100 = vadd.xlane.f32.xlu2 %v1176_v7  ;;  %648 = vmatpush.bf16.msra.mxu0 %v871_v47 }
  0x21   :  { %130 = vadd.xlane.f32.xlu1 %v113_v8  ;;  %973 = vmatpush.bf16.msra.mxu3 %v875_v49  ;;  %v859_v8 = vor.u32 %v906_v62, %v856_v5 }
  0x22   :  { %697 = vmatpush.bf16.msra.mxu1 %v875_v49 }
  0x23   :  { %966 = vmatpush.bf16.msra.mxu2 %v863_v53 }
  0x24   :  { %649 = vmatpush.bf16.msra.mxu0 %v863_v53 }
  0x25   :  { %974 = vmatpush.bf16.msra.mxu3 %v867_v57 }
  0x26   :  { %698 = vmatpush.bf16.msra.mxu1 %v867_v57 }
  0x27   :  { %102 = vadd.xlane.f32.xlu0 %v1181_v9  ;;  %967 = vmatpush.bf16.msra.mxu2 %v855_v6 }
  0x28   :  { %150 = vadd.xlane.f32.xlu2 %v123_v10  ;;  %650 = vmatpush.bf16.msra.mxu0 %v855_v6 }
  0x29   :  { %148 = vadd.xlane.f32.xlu1 %v122_v11  ;;  %975 = vmatpush.bf16.msra.mxu3 %v859_v8  ;;  %v846_v11 = vld [vmem:[#allocation6 + $0x20] sm:$0xf] }
  0x2a   :  { %699 = vmatpush.bf16.msra.mxu1 %v859_v8 }
  0x2f   :  { %84 = vadd.xlane.f32.xlu0 %v1188_v12 }
  0x30   :  { %132 = vadd.xlane.f32.xlu2 %v114_v13  ;;  %v905_v13 = vld [vmem:[#allocation6 + $0x24] sm:$0xf0] }
  0x31   :  { %86 = vadd.xlane.f32.xlu1 %v1192_v14 }
  0x37   :  { %134 = vadd.xlane.f32.xlu0 %v115_v15  ;;  %v904_v15 = vld [vmem:[#allocation6 + $0x24] sm:$0xf] }
  0x38   :  { %106 = vadd.xlane.f32.xlu2 %v1198_v16 }
  0x39   :  { %104 = vadd.xlane.f32.xlu1 %v1200_v17 }
  0x3f   :  { %152 = vadd.xlane.f32.xlu0 %v124_v18 }
  0x40   :  { %88 = vadd.xlane.f32.xlu2 %v1206_v19 }
  0x41   :  { %154 = vadd.xlane.f32.xlu1 %v125_v20  ;;  %v847_v20 = vor.u32 %v905_v13, %v846_v11 }
  0x43   :  { %968 = vmatpush.bf16.msra.mxu2 %v847_v20  ;;  %651 = vmatpush.bf16.msra.mxu0 %v847_v20 }
  0x47   :  { %90 = vadd.xlane.f32.xlu0 %v1211_v21  ;;  %969 = vmatpush.bf16.msra.mxu2 %v839_v38 }
  0x48   :  { %138 = vadd.xlane.f32.xlu2 %v117_v22  ;;  %v848_v22 = vld [vmem:[#allocation6 + $0x28] sm:$0xf0]  ;;  %652 = vmatpush.bf16.msra.mxu0 %v839_v38 }
  0x49   :  { %136 = vadd.xlane.f32.xlu1 %v116_v23 }
  0x4b   :  { %970 = vmatpush.bf16.msra.mxu2 %v831_v50 }
  0x4c   :  { %653 = vmatpush.bf16.msra.mxu0 %v831_v50 }
  0x4f   :  { %108 = vadd.xlane.f32.xlu0 %v1218_v24 }
  0x50   :  { %156 = vadd.xlane.f32.xlu2 %v126_v25 }
  0x51   :  { %110 = vadd.xlane.f32.xlu1 %v1222_v26 }
  0x57   :  { %158 = vadd.xlane.f32.xlu0 %v127_v27  ;;  %v851_v27 = vor.u32 %v904_v15, %v848_v22 }
  0x58   :  { %94 = vadd.xlane.f32.xlu2 %v1228_v28 }
  0x59   :  { %92 = vadd.xlane.f32.xlu1 %v1230_v29  ;;  %976 = vmatpush.bf16.msra.mxu3 %v851_v27 }
  0x5a   :  { %700 = vmatpush.bf16.msra.mxu1 %v851_v27 }
  0x5d   :  { %977 = vmatpush.bf16.msra.mxu3 %v843_v42 }
  0x5e   :  { %701 = vmatpush.bf16.msra.mxu1 %v843_v42 }
  0x5f   :  { %140 = vadd.xlane.f32.xlu0 %v118_v30 }
  0x61   :  { %142 = vadd.xlane.f32.xlu1 %v119_v31 }
  0x82   :  { %v97_v55 = vpop.xlane.xlu0 %96 }
  0x83   :  { %v81_v56 = vpop.xlane.xlu2 %80  ;;  %v1238_v58 = vmul.f32 0.0078125, %v97_v55 }
  0x84   :  { %v145_v59 = vpop.xlane.xlu1 %144  ;;  %v1249_v40 = vmul.f32 0.0078125, %v81_v56  ;;  %v835_v56 = vor.u32 %v900_v46, %v832_v51 }
  0x85   :  { %v200_v63 = vmul.f32 %v1238_v58, %v1238_v58  ;;  %v184_v2 = vmul.f32 0.0078125, %v145_v59 }
  0x86   :  { %v192_v53 = vmul.f32 %v1249_v40, %v1249_v40  ;;  %978 = vmatpush.bf16.msra.mxu3 %v835_v56  ;;  %702 = vmatpush.bf16.msra.mxu1 %v835_v56 }
  0x87   :  { %v216_v10 = vsub.f32 %v184_v2, %v200_v63 }
  0x89   :  { %v232_v18 = vmax.f32 %v216_v10, 0.0 }
  0x8a   :  { %v99_v23 = vpop.xlane.xlu0 %98 }
  0x8b   :  { %v83_v25 = vpop.xlane.xlu2 %82  ;;  %v1242_v30 = vadd.f32 1e-05, %v232_v18  ;;  %v1244_v31 = vmul.f32 0.0078125, %v99_v23 }
  0x8c   :  { %v147_v32 = vpop.xlane.xlu1 %146  ;;  %v1251_v41 = vmul.f32 0.0078125, %v83_v25 }
  0x8d   :  { %987 = vrsqrt.f32 %v1242_v30  ;;  %v201_v33 = vmul.f32 %v1244_v31, %v1244_v31  ;;  %v185_v37 = vmul.f32 0.0078125, %v147_v32  ;;  %vm358_vm1 = vweird.f32 %v1242_v30 }
  0x8e   :  { %v193_v54 = vmul.f32 %v1251_v41, %v1251_v41  ;;  %v249_v46 = vsub.f32 %v1166_v3, %v1244_v31  ;;  %v241_v45 = vsub.f32 %v1168_v4, %v1251_v41 }
  0x8f   :  { %v217_v43 = vsub.f32 %v185_v37, %v201_v33 }
  0x91   :  { %v233_v47 = vmax.f32 %v217_v43, 0.0  ;;  %v248_v43 = vsub.f32 %v1158_v0, %v1238_v58 }
  0x92   :  { %v129_v48 = vpop.xlane.xlu0 %128 }
  0x93   :  { %v101_v49 = vpop.xlane.xlu2 %100  ;;  %v1253_v52 = vpop.eup %987  ;;  %v176_v55 = vmul.f32 0.0078125, %v129_v48  ;;  %v265_v59 = vadd.f32 1e-05, %v233_v47 }
  0x94   :  { %v353_v57 = vmul.f32 %v1253_v52, %v1242_v30  ;;  %v131_v60 = vpop.xlane.xlu1 %130  ;;  %v1262_v8 = vmul.f32 0.0078125, %v101_v49  ;;  %vm359_vm0 = vweird.f32 %v1253_v52 }
  0x95   :  { %v208_v61 = vsub.f32 %v176_v55, %v192_v53  ;;  %v177_v62 = vmul.f32 0.0078125, %v131_v60  ;;  %989 = vrsqrt.f32 %v265_v59  ;;  %vm1283_vm2 = vmor %vm358_vm1, %vm359_vm0  ;;  %vm368_vm4 = vweird.f32 %v265_v59 }
  0x96   :  { %v354_v63 = vmul.f32 %v1253_v52, %v353_v57  ;;  %v202_v25 = vmul.f32 %v1262_v8, %v1262_v8 }
  0x97   :  { %v224_v2 = vmax.f32 %v208_v61, 0.0  ;;  %v209_v5 = vsub.f32 %v177_v62, %v193_v54 }
  0x98   :  { %v355_v6 = vmul.f32 0.5, %v354_v63 }
  0x99   :  { %v1264_v10 = vadd.f32 1e-05, %v224_v2  ;;  %v225_v11 = vmax.f32 %v209_v5, 0.0 }
  0x9a   :  { %v103_v13 = vpop.xlane.xlu0 %102  ;;  %v356_v18 = vsub.f32 1.5, %v355_v6 }
  0x9b   :  { %v151_v15 = vpop.xlane.xlu2 %150  ;;  %991 = vrsqrt.f32 %v1264_v10  ;;  %v1267_v20 = vadd.f32 1e-05, %v225_v11  ;;  %v1269_v22 = vmul.f32 0.0078125, %v103_v13  ;;  %v990_v23 = vpop.eup %989  ;;  %vm278_vm7 = vweird.f32 %v1264_v10 }
  0x9c   :  { %v149_v27 = vpop.xlane.xlu1 %148  ;;  %v187_v32 = vmul.f32 0.0078125, %v151_v15  ;;  %v363_v33 = vmul.f32 %v990_v23, %v265_v59  ;;  %v357_v36 = vmul.f32 %v1253_v52, %v356_v18  ;;  %vm369_vm3 = vweird.f32 %v990_v23 }
  0x9d   :  { %993 = vrsqrt.f32 %v1267_v20  ;;  %v203_v34 = vmul.f32 %v1269_v22, %v1269_v22  ;;  %v186_v35 = vmul.f32 0.0078125, %v149_v27  ;;  %vm370_vm5 = vmor %vm368_vm4, %vm369_vm3  ;;  %vm288_vm10 = vweird.f32 %v1267_v20 }
  0x9e   :  { %v364_v37 = vmul.f32 %v990_v23, %v363_v33  ;;  %v361_v0 = vsel %vm1283_vm2, %v1253_v52, %v357_v36 }
  0x9f   :  { %v218_v38 = vsub.f32 %v186_v35, %v202_v25  ;;  %v219_v39 = vsub.f32 %v187_v32, %v203_v34  ;;  %v440_v52 = vmul.f32 %v361_v0, %v248_v43 }
  0xa0   :  { %v365_v44 = vmul.f32 0.5, %v364_v37 }
  0xa1   :  { %v1278_v42 = vpop.eup %991  ;;  %v234_v48 = vmax.f32 %v218_v38, 0.0  ;;  %v235_v49 = vmax.f32 %v219_v39, 0.0 }
  0xa2   :  { %v273_v47 = vmul.f32 %v1278_v42, %v1264_v10  ;;  %v85_v50 = vpop.xlane.xlu0 %84  ;;  %v366_v58 = vsub.f32 1.5, %v365_v44  ;;  %vm279_vm6 = vweird.f32 %v1278_v42  ;;  %v240_v44 = vsub.f32 %v1160_v1, %v1249_v40 }
  0xa3   :  { %v133_v51 = vpop.xlane.xlu2 %132  ;;  %v994_v53 = vpop.eup %993  ;;  %v1294_v30 = vmul.f32 0.0078125, %v85_v50  ;;  %v1298_v31 = vadd.f32 1e-05, %v234_v48  ;;  %v1300_v60 = vadd.f32 1e-05, %v235_v49  ;;  %vm1313_vm9 = vmor %vm278_vm7, %vm279_vm6 }
  0xa4   :  { %v274_v54 = vmul.f32 %v1278_v42, %v273_v47  ;;  %v283_v3 = vmul.f32 %v994_v53, %v1267_v20  ;;  %v87_v55 = vpop.xlane.xlu1 %86  ;;  %v178_v56 = vmul.f32 0.0078125, %v133_v51  ;;  %v367_v57 = vmul.f32 %v990_v23, %v366_v58 }
  0xa5   :  { %v194_v61 = vmul.f32 %v1294_v30, %v1294_v30  ;;  %995 = vrsqrt.f32 %v1298_v31  ;;  %v1307_v5 = vmul.f32 0.0078125, %v87_v55  ;;  %vm289_vm8 = vweird.f32 %v994_v53 }
  0xa6   :  { %v275_v62 = vmul.f32 0.5, %v274_v54  ;;  %v284_v63 = vmul.f32 %v994_v53, %v283_v3  ;;  %v371_v2 = vsel %vm370_vm5, %v990_v23, %v367_v57  ;;  %997 = vrsqrt.f32 %v1300_v60  ;;  %vm290_vm11 = vmor %vm288_vm10, %vm289_vm8 }
  0xa7   :  { %v441_v6 = vmul.f32 %v371_v2, %v249_v46  ;;  %v210_v13 = vsub.f32 %v178_v56, %v194_v61  ;;  %v195_v34 = vmul.f32 %v1307_v5, %v1307_v5  ;;  %vm378_vm14 = vweird.f32 %v1298_v31 }
  0xa8   :  { %v276_v59 = vsub.f32 1.5, %v275_v62  ;;  %v285_v11 = vmul.f32 0.5, %v284_v63  ;;  %v250_v62 = vsub.f32 %v1176_v7, %v1262_v8  ;;  %vm388_vm0 = vweird.f32 %v1300_v60 }
  0xa9   :  { %v939_v15 = vpack.c.bf16 %v441_v6, %v440_v52  ;;  %v226_v27 = vmax.f32 %v210_v13, 0.0 }
  0xaa   :  { %v277_v18 = vmul.f32 %v1278_v42, %v276_v59  ;;  %v286_v25 = vsub.f32 1.5, %v285_v11  ;;  %v135_v32 = vpop.xlane.xlu0 %134 }
  0xab   :  { %v107_v23 = vpop.xlane.xlu2 %106  ;;  %v179_v35 = vmul.f32 0.0078125, %v135_v32  ;;  %v996_v36 = vpop.eup %995  ;;  %959 = vst [vmem:[#allocation2 + $0x8] sm:$0xff] %v939_v15   ;;  %v1323_v38 = vadd.f32 1e-05, %v226_v27  ;;  %v251_v15 = vsub.f32 %v1181_v9, %v1269_v22 }
  0xac   :  { %v281_v10 = vsel %vm1313_vm9, %v1278_v42, %v277_v18  ;;  %v287_v37 = vmul.f32 %v994_v53, %v286_v25  ;;  %v105_v39 = vpop.xlane.xlu1 %104  ;;  %v998_v43 = vpop.eup %997  ;;  %v373_v46 = vmul.f32 %v996_v36, %v1298_v31  ;;  %v1335_v1 = vmul.f32 0.0078125, %v107_v23 }
  0xad   :  { %v211_v47 = vsub.f32 %v179_v35, %v195_v34  ;;  %v383_v42 = vmul.f32 %v998_v43, %v1300_v60  ;;  %999 = vrsqrt.f32 %v1323_v38  ;;  %v432_v20 = vmul.f32 %v281_v10, %v240_v44 }
  0xae   :  { %v291_v48 = vsel %vm290_vm11, %v994_v53, %v287_v37  ;;  %v374_v50 = vmul.f32 %v996_v36, %v373_v46  ;;  %v1333_v58 = vmul.f32 0.0078125, %v105_v39  ;;  %vm379_vm12 = vweird.f32 %v996_v36 }
  0xaf   :  { %v433_v49 = vmul.f32 %v291_v48, %v241_v45  ;;  %v227_v51 = vmax.f32 %v211_v47, 0.0  ;;  %v384_v0 = vmul.f32 %v998_v43, %v383_v42  ;;  %vm389_vm13 = vweird.f32 %v998_v43  ;;  %vm380_vm15 = vmor %vm378_vm14, %vm379_vm12 }
  0xb0   :  { %v375_v40 = vmul.f32 0.5, %v374_v50  ;;  %v204_v56 = vmul.f32 %v1333_v58, %v1333_v58  ;;  %v205_v2 = vmul.f32 %v1335_v1, %v1335_v1  ;;  %vm390_vm1 = vmor %vm388_vm0, %vm389_vm13  ;;  %vm298_vm3 = vweird.f32 %v1323_v38 }
  0xb1   :  { %v919_v4 = vpack.c.bf16 %v433_v49, %v432_v20  ;;  %v1337_v41 = vadd.f32 1e-05, %v227_v51  ;;  %v385_v54 = vmul.f32 0.5, %v384_v0 }
  0xb2   :  { %v153_v53 = vpop.xlane.xlu0 %152  ;;  %v376_v55 = vsub.f32 1.5, %v375_v40  ;;  %v896_v61 = vld [vmem:[#allocation2 + $0x8] sm:$0xff] }
  0xb3   :  { %v89_v3 = vpop.xlane.xlu2 %88  ;;  %920 = vst [vmem:[#allocation2 + $0x30] sm:$0xff] %v919_v4   ;;  %1001 = vrsqrt.f32 %v1337_v41  ;;  %v188_v57 = vmul.f32 0.0078125, %v153_v53  ;;  %v1342_v52 = vpop.eup %999  ;;  %v386_v63 = vsub.f32 1.5, %v385_v54  ;;  %674 = vmatmul.bf16.vlgmr.msra.gmra.mxu2 %v896_v61  ;;  %723 = vmatmul.bf16.vlgmr.msra.gmra.mxu3 %v896_v61  ;;  %vm308_vm6 = vweird.f32 %v1337_v41 }
  0xb4   :  { %v155_v6 = vpop.xlane.xlu1 %154  ;;  %v377_v59 = vmul.f32 %v996_v36, %v376_v55  ;;  %v293_v11 = vmul.f32 %v1342_v52, %v1323_v38  ;;  %v1357_v27 = vmul.f32 0.0078125, %v89_v3  ;;  %vm299_vm2 = vweird.f32 %v1342_v52 }
  0xb5   :  { %v220_v13 = vsub.f32 %v188_v57, %v204_v56  ;;  %v387_v7 = vmul.f32 %v998_v43, %v386_v63  ;;  %v189_v8 = vmul.f32 0.0078125, %v155_v6  ;;  %vm1375_vm4 = vmor %vm298_vm3, %vm299_vm2  ;;  %v242_v55 = vsub.f32 %v1188_v12, %v1294_v30 }
  0xb6   :  { %v381_v18 = vsel %vm380_vm15, %v996_v36, %v377_v59  ;;  %v294_v31 = vmul.f32 %v1342_v52, %v293_v11  ;;  %v196_v46 = vmul.f32 %v1357_v27, %v1357_v27  ;;  %v243_v6 = vsub.f32 %v1192_v14, %v1307_v5 }
  0xb7   :  { %v236_v25 = vmax.f32 %v220_v13, 0.0  ;;  %v442_v32 = vmul.f32 %v381_v18, %v250_v62  ;;  %v391_v23 = vsel %vm390_vm1, %v998_v43, %v387_v7  ;;  %v221_v33 = vsub.f32 %v189_v8, %v205_v2 }
  0xb8   :  { %v443_v35 = vmul.f32 %v391_v23, %v251_v15  ;;  %v295_v9 = vmul.f32 0.5, %v294_v31 }
  0xb9   :  { %v1002_v34 = vpop.eup %1001  ;;  %v1359_v22 = vadd.f32 1e-05, %v236_v25  ;;  %v237_v60 = vmax.f32 %v221_v33, 0.0 }
  0xba   :  { %v303_v10 = vmul.f32 %v1002_v34, %v1337_v41  ;;  %v91_v37 = vpop.xlane.xlu0 %90  ;;  %v892_v39 = vld [vmem:[#allocation2 + $0x30] sm:$0xff]  ;;  %v944_v44 = vpack.c.bf16 %v443_v35, %v442_v32  ;;  %v296_v45 = vsub.f32 1.5, %v295_v9  ;;  %vm309_vm5 = vweird.f32 %v1002_v34 }
  0xbb   :  { %v139_v36 = vpop.xlane.xlu2 %138  ;;  %1003 = vrsqrt.f32 %v1359_v22  ;;  %v1365_v47 = vadd.f32 1e-05, %v237_v60  ;;  %v1367_v48 = vmul.f32 0.0078125, %v91_v37  ;;  %654 = vmatmul.bf16.vlgmr.msra.gmra.mxu0 %v892_v39  ;;  %703 = vmatmul.bf16.vlgmr.msra.gmra.mxu1 %v892_v39  ;;  %vm310_vm7 = vmor %vm308_vm6, %vm309_vm5  ;;  %vm398_vm9 = vweird.f32 %v1359_v22 }
  0xbc   :  { %v304_v43 = vmul.f32 %v1002_v34, %v303_v10  ;;  %v137_v42 = vpop.xlane.xlu1 %136  ;;  %v181_v20 = vmul.f32 0.0078125, %v139_v36  ;;  %960 = vst [vmem:[#allocation2 + $0x20] sm:$0xff] %v944_v44   ;;  %v297_v49 = vmul.f32 %v1342_v52, %v296_v45  ;;  %v253_v45 = vsub.f32 %v1198_v16, %v1335_v1 }
  0xbd   :  { %v180_v50 = vmul.f32 0.0078125, %v137_v42  ;;  %1005 = vrsqrt.f32 %v1365_v47  ;;  %v197_v0 = vmul.f32 %v1367_v48, %v1367_v48  ;;  %vm408_vm12 = vweird.f32 %v1365_v47 }
  0xbe   :  { %v305_v51 = vmul.f32 0.5, %v304_v43  ;;  %v301_v56 = vsel %vm1375_vm4, %v1342_v52, %v297_v49  ;;  %v252_v1 = vsub.f32 %v1200_v17, %v1333_v58 }
  0xbf   :  { %v212_v4 = vsub.f32 %v180_v50, %v196_v46  ;;  %v213_v53 = vsub.f32 %v181_v20, %v197_v0  ;;  %v434_v52 = vmul.f32 %v301_v56, %v242_v55 }
  0xc0   :  { %v306_v54 = vsub.f32 1.5, %v305_v51 }
  0xc1   :  { %v1379_v3 = vpop.eup %1003  ;;  %v228_v57 = vmax.f32 %v212_v4, 0.0  ;;  %v229_v62 = vmax.f32 %v213_v53, 0.0 }
  0xc2   :  { %v307_v61 = vmul.f32 %v1002_v34, %v306_v54  ;;  %v393_v38 = vmul.f32 %v1379_v3, %v1359_v22  ;;  %v109_v63 = vpop.xlane.xlu0 %108  ;;  %vm399_vm8 = vweird.f32 %v1379_v3 }
  0xc3   :  { %v157_v2 = vpop.xlane.xlu2 %156  ;;  %v1391_v59 = vadd.f32 1e-05, %v228_v57  ;;  %v1393_v12 = vmul.f32 0.0078125, %v109_v63  ;;  %v1006_v30 = vpop.eup %1005  ;;  %v1396_v41 = vadd.f32 1e-05, %v229_v62  ;;  %v897_v7 = vld [vmem:[#allocation2 + $0x20] sm:$0xff]  ;;  %vm1410_vm11 = vmor %vm398_vm9, %vm399_vm8 }
  0xc4   :  { %v311_v11 = vsel %vm310_vm7, %v1002_v34, %v307_v61  ;;  %v394_v13 = vmul.f32 %v1379_v3, %v393_v38  ;;  %v111_v15 = vpop.xlane.xlu1 %110  ;;  %v403_v18 = vmul.f32 %v1006_v30, %v1365_v47  ;;  %v190_v14 = vmul.f32 0.0078125, %v157_v2  ;;  %679 = vmatmul.bf16.gmra.mxu2 %v897_v7  ;;  %728 = vmatmul.bf16.gmra.mxu3 %v897_v7 }
  0xc5   :  { %v435_v8 = vmul.f32 %v311_v11, %v243_v6  ;;  %1007 = vrsqrt.f32 %v1391_v59  ;;  %v206_v32 = vmul.f32 %v1393_v12, %v1393_v12  ;;  %v1403_v33 = vmul.f32 0.0078125, %v111_v15 }
  0xc6   :  { %v395_v5 = vmul.f32 0.5, %v394_v13  ;;  %1009 = vrsqrt.f32 %v1396_v41  ;;  %v404_v25 = vmul.f32 %v1006_v30, %v403_v18  ;;  %vm409_vm10 = vweird.f32 %v1006_v30 }
  0xc7   :  { %v924_v31 = vpack.c.bf16 %v435_v8, %v434_v52  ;;  %v222_v35 = vsub.f32 %v190_v14, %v206_v32  ;;  %v207_v42 = vmul.f32 %v1403_v33, %v1403_v33  ;;  %vm410_vm13 = vmor %vm408_vm12, %vm409_vm10  ;;  %v244_v52 = vsub.f32 %v1206_v19, %v1357_v27 }
  0xc8   :  { %v396_v23 = vsub.f32 1.5, %v395_v5  ;;  %v405_v34 = vmul.f32 0.5, %v404_v25  ;;  %vm318_vm0 = vweird.f32 %v1391_v59  ;;  %vm328_vm2 = vweird.f32 %v1396_v41 }
  0xc9   :  { %956 = vst [vmem:[#allocation2] sm:$0xff] %v924_v31   ;;  %v238_v36 = vmax.f32 %v222_v35, 0.0  ;;  %v245_v14 = vsub.f32 %v1211_v21, %v1367_v48 }
  0xca   :  { %v397_v9 = vmul.f32 %v1379_v3, %v396_v23  ;;  %v159_v10 = vpop.xlane.xlu0 %158  ;;  %v406_v37 = vsub.f32 1.5, %v405_v34 }
  0xcb   :  { %v1008_v60 = vpop.eup %1007  ;;  %v191_v39 = vmul.f32 0.0078125, %v159_v10  ;;  %v95_v20 = vpop.xlane.xlu2 %94  ;;  %v1425_v0 = vadd.f32 1e-05, %v238_v36 }
  0xcc   :  { %v1010_v44 = vpop.eup %1009  ;;  %v313_v43 = vmul.f32 %v1008_v60, %v1391_v59  ;;  %v93_v22 = vpop.xlane.xlu1 %92  ;;  %v401_v49 = vsel %vm1410_vm11, %v1379_v3, %v397_v9  ;;  %v407_v50 = vmul.f32 %v1006_v30, %v406_v37  ;;  %v1429_v55 = vmul.f32 0.0078125, %v95_v20 }
  0xcd   :  { %v323_v16 = vmul.f32 %v1010_v44, %v1396_v41  ;;  %v223_v4 = vsub.f32 %v191_v39, %v207_v42  ;;  %v1427_v53 = vmul.f32 0.0078125, %v93_v22  ;;  %v444_v3 = vmul.f32 %v401_v49, %v252_v1 }
  0xce   :  { %v314_v51 = vmul.f32 %v1008_v60, %v313_v43  ;;  %v411_v40 = vsel %vm410_vm13, %v1006_v30, %v407_v50  ;;  %1011 = vrsqrt.f32 %v1425_v0  ;;  %vm319_vm14 = vweird.f32 %v1008_v60 }
  0xcf   :  { %v324_v54 = vmul.f32 %v1010_v44, %v323_v16  ;;  %v445_v56 = vmul.f32 %v411_v40, %v253_v45  ;;  %v239_v17 = vmax.f32 %v223_v4, 0.0  ;;  %vm329_vm15 = vweird.f32 %v1010_v44  ;;  %vm320_vm1 = vmor %vm318_vm0, %vm319_vm14 }
  0xd0   :  { %v315_v47 = vmul.f32 0.5, %v314_v51  ;;  %v893_v57 = vld [vmem:[#allocation2] sm:$0xff]  ;;  %v198_v6 = vmul.f32 %v1427_v53, %v1427_v53  ;;  %v199_v13 = vmul.f32 %v1429_v55, %v1429_v55  ;;  %vm330_vm3 = vmor %vm328_vm2, %vm329_vm15  ;;  %vm418_vm5 = vweird.f32 %v1425_v0 }
  0xd1   :  { %v325_v61 = vmul.f32 0.5, %v324_v54  ;;  %v949_v58 = vpack.c.bf16 %v445_v56, %v444_v3  ;;  %659 = vmatmul.bf16.gmra.mxu0 %v893_v57  ;;  %708 = vmatmul.bf16.gmra.mxu1 %v893_v57  ;;  %v271_v2 = vadd.f32 1e-05, %v239_v17  ;;  %v254_v16 = vsub.f32 %v1218_v24, %v1393_v12 }
  0xd2   :  { %v316_v38 = vsub.f32 1.5, %v315_v47  ;;  %v141_v62 = vpop.xlane.xlu0 %140  ;;  %v255_v1 = vsub.f32 %v1222_v26, %v1403_v33  ;;  %v246_v33 = vsub.f32 %v1230_v29, %v1427_v53 }
  0xd3   :  { %v326_v63 = vsub.f32 1.5, %v325_v61  ;;  %v182_v30 = vmul.f32 0.0078125, %v141_v62  ;;  %961 = vst [vmem:[#allocation2 + $0x28] sm:$0xff] %v949_v58   ;;  %1013 = vrsqrt.f32 %v271_v2  ;;  %vm428_vm8 = vweird.f32 %v271_v2 }
  0xd4   :  { %v317_v11 = vmul.f32 %v1008_v60, %v316_v38  ;;  %v143_v15 = vpop.xlane.xlu1 %142  ;;  %v1012_v18 = vpop.eup %1011  ;;  %v247_v58 = vsub.f32 %v1228_v28, %v1429_v55 }
  0xd5   :  { %v327_v7 = vmul.f32 %v1010_v44, %v326_v63  ;;  %v214_v8 = vsub.f32 %v182_v30, %v198_v6  ;;  %v183_v19 = vmul.f32 0.0078125, %v143_v15  ;;  %v413_v31 = vmul.f32 %v1012_v18, %v1425_v0 }
  0xd6   :  { %v321_v5 = vsel %vm320_vm1, %v1008_v60, %v317_v11  ;;  %vm419_vm4 = vweird.f32 %v1012_v18 }
  0xd7   :  { %v436_v27 = vmul.f32 %v321_v5, %v244_v52  ;;  %v331_v59 = vsel %vm330_vm3, %v1010_v44, %v327_v7  ;;  %v230_v32 = vmax.f32 %v214_v8, 0.0  ;;  %v215_v23 = vsub.f32 %v183_v19, %v199_v13  ;;  %vm420_vm7 = vmor %vm418_vm5, %vm419_vm4  ;;  %v512_v52 = vld [vmem:[#allocation8] sm:$0x3] }
  0xd8   :  { %v437_v25 = vmul.f32 %v331_v59, %v245_v14  ;;  %v414_v34 = vmul.f32 %v1012_v18, %v413_v31  ;;  %v1454_v11 = vperm.slane %v512_v52, 0  ;;  %v1456_v13 = vperm.slane %v512_v52, 1 }
  0xd9   :  { %v262_v41 = vadd.f32 1e-05, %v230_v32  ;;  %v231_v9 = vmax.f32 %v215_v23, 0.0  ;;  %v1014_v10 = vpop.eup %1013 }
  0xda   :  { %v929_v35 = vpack.c.bf16 %v437_v25, %v436_v27  ;;  %v415_v37 = vmul.f32 0.5, %v414_v34  ;;  %v898_v36 = vld [vmem:[#allocation2 + $0x28] sm:$0xff]  ;;  %v423_v21 = vmul.f32 %v1014_v10, %v271_v2  ;;  %vm429_vm6 = vweird.f32 %v1014_v10 }
  0xdb   :  { %1015 = vrsqrt.f32 %v262_v41  ;;  %v263_v60 = vadd.f32 1e-05, %v231_v9  ;;  %684 = vmatmul.bf16.gmra.mxu2 %v898_v36  ;;  %733 = vmatmul.bf16.gmra.mxu3 %v898_v36  ;;  %vm430_vm9 = vmor %vm428_vm8, %vm429_vm6  ;;  %vm338_vm11 = vweird.f32 %v262_v41 }
  0xdc   :  { %957 = vst [vmem:[#allocation2 + $0x18] sm:$0xff] %v929_v35   ;;  %v416_v48 = vsub.f32 1.5, %v415_v37  ;;  %v424_v39 = vmul.f32 %v1014_v10, %v423_v21 }
  0xdd   :  { %1017 = vrsqrt.f32 %v263_v60  ;;  %vm348_vm14 = vweird.f32 %v263_v60 }
  0xde   :  { %v417_v44 = vmul.f32 %v1012_v18, %v416_v48  ;;  %v425_v45 = vmul.f32 0.5, %v424_v39 }
  0xe0   :  { %v426_v43 = vsub.f32 1.5, %v425_v45  ;;  %v421_v20 = vsel %vm420_vm7, %v1012_v18, %v417_v44 }
  0xe1   :  { %v1016_v46 = vpop.eup %1015  ;;  %v446_v40 = vmul.f32 %v421_v20, %v254_v16 }
  0xe2   :  { %v333_v42 = vmul.f32 %v1016_v46, %v262_v41  ;;  %v427_v49 = vmul.f32 %v1014_v10, %v426_v43  ;;  %vm339_vm10 = vweird.f32 %v1016_v46 }
  0xe3   :  { %v894_v22 = vld [vmem:[#allocation2 + $0x18] sm:$0xff]  ;;  %v1018_v50 = vpop.eup %1017  ;;  %vm340_vm13 = vmor %vm338_vm11, %vm339_vm10 }
  0xe4   :  { %v334_v51 = vmul.f32 %v1016_v46, %v333_v42  ;;  %664 = vmatmul.bf16.gmra.mxu0 %v894_v22  ;;  %713 = vmatmul.bf16.gmra.mxu1 %v894_v22  ;;  %v431_v0 = vsel %vm430_vm9, %v1014_v10, %v427_v49  ;;  %v343_v4 = vmul.f32 %v1018_v50, %v263_v60  ;;  %vm349_vm12 = vweird.f32 %v1018_v50 }
  0xe5   :  { %v447_v54 = vmul.f32 %v431_v0, %v255_v1  ;;  %vm350_vm15 = vmor %vm348_vm14, %vm349_vm12 }
  0xe6   :  { %v335_v3 = vmul.f32 0.5, %v334_v51  ;;  %v344_v56 = vmul.f32 %v1018_v50, %v343_v4 }
  0xe7   :  { %v954_v47 = vpack.c.bf16 %v447_v54, %v446_v40 }
  0xe8   :  { %v336_v57 = vsub.f32 1.5, %v335_v3  ;;  %v345_v61 = vmul.f32 0.5, %v344_v56 }
  0xe9   :  { %962 = vst [vmem:[#allocation2 + $0x38] sm:$0xff] %v954_v47  }
  0xea   :  { %v337_v17 = vmul.f32 %v1016_v46, %v336_v57  ;;  %v346_v24 = vsub.f32 1.5, %v345_v61 }
  0xec   :  { %v341_v26 = vsel %vm340_vm13, %v1016_v46, %v337_v17  ;;  %v347_v12 = vmul.f32 %v1018_v50, %v346_v24 }
  0xed   :  { %v438_v62 = vmul.f32 %v341_v26, %v246_v33 }
  0xee   :  { %v351_v38 = vsel %vm350_vm15, %v1018_v50, %v347_v12 }
  0xef   :  { %v439_v63 = vmul.f32 %v351_v38, %v247_v58 }
  0xf0   :  { %v899_v2 = vld [vmem:[#allocation2 + $0x38] sm:$0xff] }
  0xf1   :  { %v934_v6 = vpack.c.bf16 %v439_v63, %v438_v62  ;;  %689 = vmatmul.bf16.gmra.mxu2 %v899_v2  ;;  %738 = vmatmul.bf16.gmra.mxu3 %v899_v2 }
  0xf3   :  { %958 = vst [vmem:[#allocation2 + $0x10] sm:$0xff] %v934_v6  }
  0xfa   :  { %v895_v30 = vld [vmem:[#allocation2 + $0x10] sm:$0xff] }
  0xfb   :  { %669 = vmatmul.bf16.gmra.mxu0 %v895_v30  ;;  %718 = vmatmul.bf16.gmra.mxu1 %v895_v30 }
 0x136   :  { %v675_v29 = vpop.f32.mrf.mxu2  ;;  %v724_v53 = vpop.f32.mrf.mxu3 }
 0x137   :  { %v676_v28 = vadd.f32 %v675_v29, %v1454_v11  ;;  %v725_v55 = vadd.f32 %v724_v53, %v1456_v13 }
 0x138   :  { %v655_v15 = vpop.f32.mrf.mxu0  ;;  %v704_v7 = vpop.f32.mrf.mxu1 }
 0x139   :  { %v656_v8 = vadd.f32 %v655_v15, %v1454_v11  ;;  %v705_v18 = vadd.f32 %v704_v7, %v1456_v13  ;;  %760 = vst [vmem:[#allocation9 + $0x80] sm:$0xff] %v676_v28 }
 0x13a   :  { %761 = vst [vmem:[#allocation9 + $0x88] sm:$0xff] %v725_v55 }
 0x13b   :  { %744 = vst [vmem:[#allocation9] sm:$0xff] %v656_v8 }
 0x13c   :  { %745 = vst [vmem:[#allocation9 + $0x8] sm:$0xff] %v705_v18 }
 0x13e   :  { %v677_v14 = vpop.f32.mrf.mxu2  ;;  %v726_v5 = vpop.f32.mrf.mxu3 }
 0x13f   :  { %v678_v19 = vadd.f32 %v677_v14, %v1454_v11  ;;  %v727_v27 = vadd.f32 %v726_v5, %v1456_v13 }
 0x140   :  { %v657_v59 = vpop.f32.mrf.mxu0  ;;  %v706_v31 = vpop.f32.mrf.mxu1 }
 0x141   :  { %v658_v25 = vadd.f32 %v657_v59, %v1454_v11  ;;  %v707_v32 = vadd.f32 %v706_v31, %v1456_v13  ;;  %762 = vst [vmem:[#allocation9 + $0x90] sm:$0xff] %v678_v19 }
 0x142   :  { %763 = vst [vmem:[#allocation9 + $0x98] sm:$0xff] %v727_v27 }
 0x143   :  { %746 = vst [vmem:[#allocation9 + $0x10] sm:$0xff] %v658_v25 }
 0x144   :  { %747 = vst [vmem:[#allocation9 + $0x18] sm:$0xff] %v707_v32 }
 0x147   :  { %v680_v23 = vpop.f32.mrf.mxu2  ;;  %v729_v34 = vpop.f32.mrf.mxu3 }
 0x148   :  { %v681_v35 = vadd.f32 %v680_v23, %v1454_v11  ;;  %v730_v41 = vadd.f32 %v729_v34, %v1456_v13 }
 0x14a   :  { %764 = vst [vmem:[#allocation9 + $0xa0] sm:$0xff] %v681_v35 }
 0x14b   :  { %765 = vst [vmem:[#allocation9 + $0xa8] sm:$0xff] %v730_v41 }
 0x14e   :  { %v660_v9 = vpop.f32.mrf.mxu0  ;;  %v709_v10 = vpop.f32.mrf.mxu1 }
 0x14f   :  { %v661_v37 = vadd.f32 %v660_v9, %v1454_v11  ;;  %v710_v36 = vadd.f32 %v709_v10, %v1456_v13  ;;  %v682_v21 = vpop.f32.mrf.mxu2  ;;  %v731_v48 = vpop.f32.mrf.mxu3 }
 0x150   :  { %v683_v60 = vadd.f32 %v682_v21, %v1454_v11  ;;  %v732_v39 = vadd.f32 %v731_v48, %v1456_v13 }
 0x151   :  { %748 = vst [vmem:[#allocation9 + $0x20] sm:$0xff] %v661_v37 }
 0x152   :  { %749 = vst [vmem:[#allocation9 + $0x28] sm:$0xff] %v710_v36 }
 0x153   :  { %766 = vst [vmem:[#allocation9 + $0xb0] sm:$0xff] %v683_v60 }
 0x154   :  { %767 = vst [vmem:[#allocation9 + $0xb8] sm:$0xff] %v732_v39 }
 0x156   :  { %v662_v44 = vpop.f32.mrf.mxu0  ;;  %v711_v45 = vpop.f32.mrf.mxu1 }
 0x157   :  { %v663_v46 = vadd.f32 %v662_v44, %v1454_v11  ;;  %v712_v43 = vadd.f32 %v711_v45, %v1456_v13 }
 0x159   :  { %750 = vst [vmem:[#allocation9 + $0x30] sm:$0xff] %v663_v46 }
 0x15a   :  { %751 = vst [vmem:[#allocation9 + $0x38] sm:$0xff] %v712_v43 }
 0x15e   :  { %v685_v42 = vpop.f32.mrf.mxu2  ;;  %v734_v22 = vpop.f32.mrf.mxu3 }
 0x15f   :  { %v686_v20 = vadd.f32 %v685_v42, %v1454_v11  ;;  %v735_v49 = vadd.f32 %v734_v22, %v1456_v13 }
 0x161   :  { %v665_v50 = vpop.f32.mrf.mxu0  ;;  %v714_v16 = vpop.f32.mrf.mxu1  ;;  %768 = vst [vmem:[#allocation9 + $0xc0] sm:$0xff] %v686_v20 }
 0x162   :  { %v666_v1 = vadd.f32 %v665_v50, %v1454_v11  ;;  %v715_v51 = vadd.f32 %v714_v16, %v1456_v13  ;;  %769 = vst [vmem:[#allocation9 + $0xc8] sm:$0xff] %v735_v49 }
 0x164   :  { %752 = vst [vmem:[#allocation9 + $0x40] sm:$0xff] %v666_v1 }
 0x165   :  { %753 = vst [vmem:[#allocation9 + $0x48] sm:$0xff] %v715_v51 }
 0x166   :  { %v687_v0 = vpop.f32.mrf.mxu2  ;;  %v736_v4 = vpop.f32.mrf.mxu3 }
 0x167   :  { %v688_v40 = vadd.f32 %v687_v0, %v1454_v11  ;;  %v737_v54 = vadd.f32 %v736_v4, %v1456_v13 }
 0x169   :  { %v667_v3 = vpop.f32.mrf.mxu0  ;;  %v716_v56 = vpop.f32.mrf.mxu1  ;;  %770 = vst [vmem:[#allocation9 + $0xd0] sm:$0xff] %v688_v40 }
 0x16a   :  { %v668_v47 = vadd.f32 %v667_v3, %v1454_v11  ;;  %v717_v57 = vadd.f32 %v716_v56, %v1456_v13  ;;  %771 = vst [vmem:[#allocation9 + $0xd8] sm:$0xff] %v737_v54 }
 0x16c   :  { %754 = vst [vmem:[#allocation9 + $0x50] sm:$0xff] %v668_v47 }
 0x16d   :  { %755 = vst [vmem:[#allocation9 + $0x58] sm:$0xff] %v717_v57 }
 0x174   :  { %v690_v61 = vpop.f32.mrf.mxu2  ;;  %v739_v17 = vpop.f32.mrf.mxu3 }
 0x175   :  { %v691_v24 = vadd.f32 %v690_v61, %v1454_v11  ;;  %v740_v26 = vadd.f32 %v739_v17, %v1456_v13 }
 0x177   :  { %772 = vst [vmem:[#allocation9 + $0xe0] sm:$0xff] %v691_v24 }
 0x178   :  { %773 = vst [vmem:[#allocation9 + $0xe8] sm:$0xff] %v740_v26  ;;  %v670_v12 = vpop.f32.mrf.mxu0  ;;  %v719_v33 = vpop.f32.mrf.mxu1 }
 0x179   :  { %v671_v58 = vadd.f32 %v670_v12, %v1454_v11  ;;  %v720_v38 = vadd.f32 %v719_v33, %v1456_v13 }
 0x17b   :  { %756 = vst [vmem:[#allocation9 + $0x60] sm:$0xff] %v671_v58 }
 0x17c   :  { %757 = vst [vmem:[#allocation9 + $0x68] sm:$0xff] %v720_v38  ;;  %v692_v62 = vpop.f32.mrf.mxu2  ;;  %v741_v63 = vpop.f32.mrf.mxu3 }
 0x17d   :  { %v693_v2 = vadd.f32 %v692_v62, %v1454_v11  ;;  %v742_v6 = vadd.f32 %v741_v63, %v1456_v13 }
 0x17f   :  { %774 = vst [vmem:[#allocation9 + $0xf0] sm:$0xff] %v693_v2 }
 0x180   :  { %775 = vst [vmem:[#allocation9 + $0xf8] sm:$0xff] %v742_v6  ;;  %v672_v30 = vpop.f32.mrf.mxu0  ;;  %v721_v52 = vpop.f32.mrf.mxu1 }
 0x181   :  { %v673_v29 = vadd.f32 %v672_v30, %v1454_v11  ;;  %v722_v53 = vadd.f32 %v721_v52, %v1456_v13 }
 0x183   :  { %758 = vst [vmem:[#allocation9 + $0x70] sm:$0xff] %v673_v29 }
 0x184   :  { %759 = vst [vmem:[#allocation9 + $0x78] sm:$0xff] %v722_v53 }
 0x185   :  { %788 = dma.vmem_to_hbm [thread:$0]  %s781_s2, 4096, %s783_s30, [#allocation5], %s1127_s4, %s1127_s4, %s1128_s5  }
 0x186   :  { %1119 = dma.done.wait [#allocation5], 4096  }
 0x187   :  { %1120 = vsyncadd [#allocation5], 4294963200 }
 0x188   :  { %793 = vsyncpa [#allocation4], 1 }
 0x189   :  { %794 = vsyncpa [#allocation7], 1 }
 0x18a   :  { %795 = vsyncpa [#allocation5], 1 }

</bundles_post_ra>
